<compile_context>
chip_gen: v7x
topology: tpu7x:2x2x1
jax: 0.10.0
libtpu: 0.0.40
codegen_flags: <defaults>
</compile_context>

<pallas_src>
import functools
import math

import jax
import jax.numpy as jnp
from jax.experimental import pallas as pl
from jax.experimental.pallas import tpu as pltpu


# ---------------------------------------------------------------------------
# helpers
# ---------------------------------------------------------------------------

def _round_up(x: int, m: int) -> int:
    return ((x + m - 1) // m) * m


def _cdiv(a: int, b: int) -> int:
    return -(-a // b)


_SQRT_2_OVER_PI = math.sqrt(2.0 / math.pi)


def _gelu_tanh(x):
    # GELU(approximate='tanh'):
    #   0.5 * x * (1 + tanh(sqrt(2/pi) * (x + 0.044715 * x^3)))
    return 0.5 * x * (1.0 + jnp.tanh(_SQRT_2_OVER_PI * (x + 0.044715 * x * x * x)))


def _vmem_capacity_bytes() -> int:
    try:
        return int(pltpu.get_tpu_info().vmem_capacity_bytes)
    except Exception:
        return 64 * 1024 * 1024  # conservative: v7x per-TensorCore VMEM


def _sublane_multiple(dtype) -> int:
    # sublane packing factor: 8 rows for 4-byte, 16 for 2-byte, 32 for 1-byte.
    return {1: 32, 2: 16, 4: 8}.get(jnp.dtype(dtype).itemsize, 8)


def _pick_tile(dim: int, cands=(512, 256, 128)) -> int:
    for c in cands:
        if dim % c == 0:
            return c
    return dim


def _resident_spec(shape):
    """Constant-index VMEM-resident block, single-buffered to save VMEM."""
    index_map = lambda i: (0,) * len(shape)
    try:
        return pl.BlockSpec(shape, index_map, pipeline_mode=pl.Buffered(1))
    except Exception:  # older jax without pipeline_mode / Buffered
        return pl.BlockSpec(shape, index_map)


# ---------------------------------------------------------------------------
# fused whole-MLP kernel (weights resident in VMEM)
# ---------------------------------------------------------------------------

def _make_fused_mlp_kernel(num_layers: int):
    def kernel(*refs):
        x_ref = refs[0]
        o_ref = refs[-1]
        wb = refs[1:-1]  # (w0, b0, w1, b1, ...)

        h = x_ref[...]  # (tm, D0_pad), lane-dense
        for li in range(num_layers):
            w = wb[2 * li][...]        # (Din_pad, Dout_pad), operand dtype
            b = wb[2 * li + 1][...]    # (1, Dout_pad), pre-cast f32
            acc = jnp.dot(h.astype(w.dtype), w,
                          preferred_element_type=jnp.float32)
            acc = acc + b
            if li < num_layers - 1:
                h = _gelu_tanh(acc)    # f32 elementwise (VPU + EUP tanh)
            else:
                h = acc
        o_ref[...] = h.astype(o_ref.dtype)

    return kernel


# ---------------------------------------------------------------------------
# fallback: per-layer (M,N,K)-tiled matmul (weights streamed, not resident)
# ---------------------------------------------------------------------------

def _linear_kernel(x_ref, w_ref, b_ref, o_ref, acc_ref, *, apply_gelu):
    @pl.when(pl.program_id(2) == 0)
    def _():
        acc_ref[...] = jnp.zeros_like(acc_ref)

    w = w_ref[...]
    acc_ref[...] += jnp.dot(x_ref[...].astype(w.dtype), w,
                            preferred_element_type=jnp.float32)

    @pl.when(pl.program_id(2) == pl.num_programs(2) - 1)
    def _():
        acc = acc_ref[...] + b_ref[...]
        if apply_gelu:
            acc = _gelu_tanh(acc)
        o_ref[...] = acc.astype(o_ref.dtype)


def _linear_tiled(x, w, b, *, apply_gelu, out_dtype, tm, vmem_cap):
    M, K = x.shape
    _, N = w.shape
    tn = _pick_tile(N)
    tk = _pick_tile(K)
    grid = (M // tm, N // tn, K // tk)

    x_isz = jnp.dtype(x.dtype).itemsize
    w_isz = jnp.dtype(w.dtype).itemsize
    o_isz = jnp.dtype(out_dtype).itemsize
    need = (2 * (tm * tk * x_isz + tk * tn * w_isz + tm * tn * o_isz)
            + tm * tn * 4 + 2 * tn * 4)
    limit = int(min(max(2 * need, 32 << 20), vmem_cap - (2 << 20)))

    return pl.pallas_call(
        functools.partial(_linear_kernel, apply_gelu=apply_gelu),
        out_shape=jax.ShapeDtypeStruct((M, N), out_dtype),
        grid_spec=pltpu.PrefetchScalarGridSpec(
            num_scalar_prefetch=0,
            grid=grid,
            in_specs=[pl.BlockSpec((tm, tk), lambda i, j, k: (i, k)),
                      pl.BlockSpec((tk, tn), lambda i, j, k: (k, j)),
                      pl.BlockSpec((1, tn), lambda i, j, k: (0, j))],
            out_specs=pl.BlockSpec((tm, tn), lambda i, j, k: (i, j)),
            scratch_shapes=[pltpu.VMEM((tm, tn), jnp.float32)]),
        compiler_params=pltpu.CompilerParams(
            dimension_semantics=("parallel", "parallel", "arbitrary"),
            vmem_limit_bytes=limit),
        cost_estimate=pl.CostEstimate(
            flops=2 * M * N * K,
            transcendentals=(M * N if apply_gelu else 0),
            bytes_accessed=(M * K * x_isz + K * N * w_isz + N * 4
                            + M * N * o_isz)),
    )(x, w, b)


# ---------------------------------------------------------------------------
# parameter handling
# ---------------------------------------------------------------------------

def init_mlp_params(key, in_features, hidden_features, out_features, num_layers,
                    dtype=jnp.float32):
    """Matches nn.Linear default init ranges. W stored as (fan_in, fan_out)."""
    dims = [in_features] + [hidden_features] * (num_layers - 1) + [out_features]
    params = []
    for li in range(num_layers):
        fan_in, fan_out = dims[li], dims[li + 1]
        key, kw, kb = jax.random.split(key, 3)
        bound = 1.0 / math.sqrt(fan_in)
        w = jax.random.uniform(kw, (fan_in, fan_out), dtype, -bound, bound)
        b = jax.random.uniform(kb, (fan_out,), dtype, -bound, bound)
        params.append((w, b))
    return params


def prepare_mlp_params(params, mxu_dtype=None):
    """Zero-pad weights/biases to lane-dense (multiple-of-128) shapes, once.

    Zero padding is exact: padded input columns hit zero weight rows, padded
    output columns get bias 0 and GELU(0)=0. Biases are pre-cast to f32 so the
    kernel adds them straight onto the f32 accumulator. mxu_dtype (e.g.
    jnp.bfloat16) optionally casts weights for the bf16-native v6e/v7x MXUs.
    Returns (padded_params, padded_dims, logical_dims)."""
    dims = [params[0][0].shape[0]] + [w.shape[1] for (w, _) in params]
    pdims = [_round_up(max(d, 128), 128) for d in dims]
    padded = []
    for li, (w, b) in enumerate(params):
        fi, fo = w.shape
        pfi, pfo = pdims[li], pdims[li + 1]
        wdt = mxu_dtype if mxu_dtype is not None else w.dtype
        wp = jnp.zeros((pfi, pfo), wdt).at[:fi, :fo].set(w.astype(wdt))
        bp = jnp.zeros((1, pfo), jnp.float32).at[0, :fo].set(b.astype(jnp.float32))
        padded.append((wp, bp))
    return padded, pdims, dims


# ---------------------------------------------------------------------------
# wrapper
# ---------------------------------------------------------------------------

def mlp_forward(x, padded_params, pdims, dims, *, block_m=None, force_tiled=False):
    """x: (B, in_features) -> (B, out_features)."""
    B, Din = x.shape
    assert Din == dims[0]
    num_layers = len(padded_params)
    dtype = x.dtype
    itemsize = jnp.dtype(dtype).itemsize

    vmem_cap = _vmem_capacity_bytes()

    # Generation-aware batch-tile ceiling: bigger on 128 MiB parts (v5e/v6e).
    if block_m is None:
        block_m = 512 if vmem_cap >= (96 << 20) else 256

    # Batch tile: multiple of the dtype's sublane packing; aim for >=2 grid
    # steps so v7x megacore has work for both TensorCores.
    sub = _sublane_multiple(dtype)
    tm = max(sub, min(block_m, _round_up(_cdiv(B, 2), sub)))
    Bp = _round_up(B, tm)

    # Pad input (zero padding, exact — see prepare_mlp_params).
    xp = jnp.zeros((Bp, pdims[0]), dtype).at[:B, :Din].set(x)

    # ---- VMEM budget for the fused, weights-resident path -----------------
    weight_bytes = sum(int(w.size) * jnp.dtype(w.dtype).itemsize
                       + int(b.size) * jnp.dtype(b.dtype).itemsize
                       for (w, b) in padded_params)          # single-buffered
    io_bytes = 2 * tm * (pdims[0] + pdims[-1]) * itemsize     # double-buffered x/out
    act_bytes = 2 * tm * max(pdims) * 4                       # in-flight f32 activations
    fused_need = weight_bytes + io_bytes + act_bytes
    budget = vmem_cap - (12 << 20)                            # Mosaic scratch headroom

    flops = 2 * Bp * sum(pdims[i] * pdims[i + 1] for i in range(num_layers))
    trans = Bp * sum(pdims[1:-1])
    bytes_acc = weight_bytes + Bp * (pdims[0] + pdims[-1]) * itemsize

    if (not force_tiled) and fused_need <= budget:
        inputs = [xp]
        in_specs = [pl.BlockSpec((tm, pdims[0]), lambda i: (i, 0))]
        for (wp, bp) in padded_params:
            inputs += [wp, bp]
            in_specs += [_resident_spec(wp.shape), _resident_spec(bp.shape)]

        limit = int(min(max(int(fused_need * 1.3) + (8 << 20), 32 << 20),
                        vmem_cap - (2 << 20)))

        out_padded = pl.pallas_call(
            _make_fused_mlp_kernel(num_layers),
            out_shape=jax.ShapeDtypeStruct((Bp, pdims[-1]), dtype),
            grid_spec=pltpu.PrefetchScalarGridSpec(
                num_scalar_prefetch=0,
                grid=(Bp // tm,),
                in_specs=in_specs,
                out_specs=pl.BlockSpec((tm, pdims[-1]), lambda i: (i, 0)),
            ),
            compiler_params=pltpu.CompilerParams(
                dimension_semantics=("parallel",),
                vmem_limit_bytes=limit),
            cost_estimate=pl.CostEstimate(flops=flops, transcendentals=trans,
                                          bytes_accessed=bytes_acc),
        )(*inputs)
    else:
        # Weights exceed the per-core VMEM budget (e.g. v7x 64 MiB): stream
        # each layer as a tiled matmul; activations round-trip HBM between
        # layers but weights are pipelined through VMEM.
        h = xp
        for li, (wp, bp) in enumerate(padded_params):
            h = _linear_tiled(h, wp, bp, apply_gelu=(li < num_layers - 1),
                              out_dtype=dtype, tm=tm, vmem_cap=vmem_cap)
        out_padded = h

    return out_padded[:B, :dims[-1]]


# ---------------------------------------------------------------------------
# pure-JAX reference
# ---------------------------------------------------------------------------

def mlp_reference(x, params):
    n = len(params)
    for li, (w, b) in enumerate(params):
        x = x @ w + b
        if li < n - 1:
            x = _gelu_tanh(x)
    return x


# ---------------------------------------------------------------------------
# main
# ---------------------------------------------------------------------------

if __name__ == "__main__":
    in_features = 32
    hidden_features = 64
    out_features = 16
    num_layers = 3
    batch = 8

    key = jax.random.PRNGKey(0)
    kx, kp = jax.random.split(key)
    x = jax.random.normal(kx, (batch, in_features), jnp.float32)
    params = init_mlp_params(kp, in_features, hidden_features, out_features,
                             num_layers)

    # One-time lane-dense padding of parameters (outside the hot path).
    # For bf16-native MXUs pass mxu_dtype=jnp.bfloat16 (relaxes tolerance).
    padded_params, pdims, dims = prepare_mlp_params(params)

    ref = mlp_reference(x, params)

    # Fused, weights-resident path.
    fwd = jax.jit(functools.partial(mlp_forward, pdims=pdims, dims=dims))
    out = jax.block_until_ready(fwd(x, padded_params))
    assert out.shape == (batch, out_features)
    assert jnp.allclose(out, ref, atol=1e-5, rtol=1e-5), "fused mismatch vs reference"

    # Also exercise the weight-streaming fallback (used when padded weights
    # exceed the VMEM budget, e.g. big hidden sizes on v7x's 64 MiB/TC).
    fwd_tiled = jax.jit(functools.partial(mlp_forward, pdims=pdims, dims=dims,
                                          force_tiled=True))
    out_t = jax.block_until_ready(fwd_tiled(x, padded_params))
    assert jnp.allclose(out_t, ref, atol=1e-5, rtol=1e-5), "tiled mismatch vs reference"

    print("KERNEL_OK")
</pallas_src>

<mosaic_0001>
module attributes {stable_mosaic.version = 11 : i64} {
  func.func @kernel(%arg0: i32, %arg1: memref<8x128xf32, #tpu.memory_space<vmem>>, %arg2: memref<128x128xf32, #tpu.memory_space<vmem>>, %arg3: memref<1x128xf32, #tpu.memory_space<vmem>>, %arg4: memref<128x128xf32, #tpu.memory_space<vmem>>, %arg5: memref<1x128xf32, #tpu.memory_space<vmem>>, %arg6: memref<128x128xf32, #tpu.memory_space<vmem>>, %arg7: memref<1x128xf32, #tpu.memory_space<vmem>>, %arg8: memref<8x128xf32, #tpu.memory_space<vmem>>) attributes {dimension_semantics = [#tpu.dimension_semantics<parallel>], iteration_bounds = array<i64: 1>, scalar_prefetch = 0 : i64, scratch_operands = 0 : i64, tpu.core_type = #tpu.core_type<tc>, window_params = [{transform_indices = @transform_0, window_bounds = array<i64: 8, 128>}, {pipeline_mode = #tpu.pipeline_mode<synchronous>, transform_indices = @transform_1, window_bounds = array<i64: 128, 128>}, {pipeline_mode = #tpu.pipeline_mode<synchronous>, transform_indices = @transform_2, window_bounds = array<i64: 1, 128>}, {pipeline_mode = #tpu.pipeline_mode<synchronous>, transform_indices = @transform_3, window_bounds = array<i64: 128, 128>}, {pipeline_mode = #tpu.pipeline_mode<synchronous>, transform_indices = @transform_4, window_bounds = array<i64: 1, 128>}, {pipeline_mode = #tpu.pipeline_mode<synchronous>, transform_indices = @transform_5, window_bounds = array<i64: 128, 128>}, {pipeline_mode = #tpu.pipeline_mode<synchronous>, transform_indices = @transform_6, window_bounds = array<i64: 1, 128>}, {transform_indices = @transform_7, window_bounds = array<i64: 8, 128>}]} {
    %c0 = arith.constant 0 : index
    %c0_0 = arith.constant 0 : index
    %0 = vector.load %arg1[%c0, %c0_0] : memref<8x128xf32, #tpu.memory_space<vmem>>, vector<8x128xf32>
    %c0_1 = arith.constant 0 : index
    %c0_2 = arith.constant 0 : index
    %1 = vector.load %arg2[%c0_1, %c0_2] : memref<128x128xf32, #tpu.memory_space<vmem>>, vector<128x128xf32>
    %c0_3 = arith.constant 0 : index
    %c0_4 = arith.constant 0 : index
    %2 = vector.load %arg3[%c0_3, %c0_4] : memref<1x128xf32, #tpu.memory_space<vmem>>, vector<1x128xf32>
    %cst = arith.constant dense<0.000000e+00> : vector<8x128xf32>
    %3 = tpu.matmul %0, %1, %cst {dimension_numbers = #tpu.dot_dimension_numbers<[1], [0], [0], [1], [0, 0, 1, 1], [], []>} : vector<8x128xf32>, vector<128x128xf32>, vector<8x128xf32> -> vector<8x128xf32>
    %4 = vector.broadcast %2 : vector<1x128xf32> to vector<8x128xf32>
    %5 = arith.addf %3, %4 : vector<8x128xf32>
    %cst_5 = arith.constant 5.000000e-01 : f32
    %6 = vector.broadcast %cst_5 : f32 to vector<8x128xf32>
    %7 = arith.mulf %6, %5 : vector<8x128xf32>
    %cst_6 = arith.constant 4.471500e-02 : f32
    %8 = vector.broadcast %cst_6 : f32 to vector<8x128xf32>
    %9 = arith.mulf %8, %5 : vector<8x128xf32>
    %10 = arith.mulf %9, %5 : vector<8x128xf32>
    %11 = arith.mulf %10, %5 : vector<8x128xf32>
    %12 = arith.addf %5, %11 : vector<8x128xf32>
    %cst_7 = arith.constant 0.797884583 : f32
    %13 = vector.broadcast %cst_7 : f32 to vector<8x128xf32>
    %14 = arith.mulf %13, %12 : vector<8x128xf32>
    %15 = math.tanh %14 : vector<8x128xf32>
    %cst_8 = arith.constant 1.000000e+00 : f32
    %16 = vector.broadcast %cst_8 : f32 to vector<8x128xf32>
    %17 = arith.addf %16, %15 : vector<8x128xf32>
    %18 = arith.mulf %7, %17 : vector<8x128xf32>
    %c0_9 = arith.constant 0 : index
    %c0_10 = arith.constant 0 : index
    %19 = vector.load %arg4[%c0_9, %c0_10] : memref<128x128xf32, #tpu.memory_space<vmem>>, vector<128x128xf32>
    %c0_11 = arith.constant 0 : index
    %c0_12 = arith.constant 0 : index
    %20 = vector.load %arg5[%c0_11, %c0_12] : memref<1x128xf32, #tpu.memory_space<vmem>>, vector<1x128xf32>
    %cst_13 = arith.constant dense<0.000000e+00> : vector<8x128xf32>
    %21 = tpu.matmul %18, %19, %cst_13 {dimension_numbers = #tpu.dot_dimension_numbers<[1], [0], [0], [1], [0, 0, 1, 1], [], []>} : vector<8x128xf32>, vector<128x128xf32>, vector<8x128xf32> -> vector<8x128xf32>
    %22 = vector.broadcast %20 : vector<1x128xf32> to vector<8x128xf32>
    %23 = arith.addf %21, %22 : vector<8x128xf32>
    %cst_14 = arith.constant 5.000000e-01 : f32
    %24 = vector.broadcast %cst_14 : f32 to vector<8x128xf32>
    %25 = arith.mulf %24, %23 : vector<8x128xf32>
    %cst_15 = arith.constant 4.471500e-02 : f32
    %26 = vector.broadcast %cst_15 : f32 to vector<8x128xf32>
    %27 = arith.mulf %26, %23 : vector<8x128xf32>
    %28 = arith.mulf %27, %23 : vector<8x128xf32>
    %29 = arith.mulf %28, %23 : vector<8x128xf32>
    %30 = arith.addf %23, %29 : vector<8x128xf32>
    %cst_16 = arith.constant 0.797884583 : f32
    %31 = vector.broadcast %cst_16 : f32 to vector<8x128xf32>
    %32 = arith.mulf %31, %30 : vector<8x128xf32>
    %33 = math.tanh %32 : vector<8x128xf32>
    %cst_17 = arith.constant 1.000000e+00 : f32
    %34 = vector.broadcast %cst_17 : f32 to vector<8x128xf32>
    %35 = arith.addf %34, %33 : vector<8x128xf32>
    %36 = arith.mulf %25, %35 : vector<8x128xf32>
    %c0_18 = arith.constant 0 : index
    %c0_19 = arith.constant 0 : index
    %37 = vector.load %arg6[%c0_18, %c0_19] : memref<128x128xf32, #tpu.memory_space<vmem>>, vector<128x128xf32>
    %c0_20 = arith.constant 0 : index
    %c0_21 = arith.constant 0 : index
    %38 = vector.load %arg7[%c0_20, %c0_21] : memref<1x128xf32, #tpu.memory_space<vmem>>, vector<1x128xf32>
    %cst_22 = arith.constant dense<0.000000e+00> : vector<8x128xf32>
    %39 = tpu.matmul %36, %37, %cst_22 {dimension_numbers = #tpu.dot_dimension_numbers<[1], [0], [0], [1], [0, 0, 1, 1], [], []>} : vector<8x128xf32>, vector<128x128xf32>, vector<8x128xf32> -> vector<8x128xf32>
    %40 = vector.broadcast %38 : vector<1x128xf32> to vector<8x128xf32>
    %41 = arith.addf %39, %40 : vector<8x128xf32>
    %c0_23 = arith.constant 0 : index
    %c0_24 = arith.constant 0 : index
    %42 = vector.load %arg8[%c0_23, %c0_24] : memref<8x128xf32, #tpu.memory_space<vmem>>, vector<8x128xf32>
    tpu.vector_store %arg8[%c0_23, %c0_24], %41 {strides = array<i32>} : memref<8x128xf32, #tpu.memory_space<vmem>>, vector<8x128xf32>,
    return
  }
  func.func @transform_0(%arg0: i32) -> (i32, i32) {
    %c0_i32 = arith.constant 0 : i32
    %c0_i32_0 = arith.constant 0 : i32
    return %arg0, %c0_i32 : i32, i32
  }
  func.func @transform_1(%arg0: i32) -> (i32, i32) {
    %c0_i32 = arith.constant 0 : i32
    %c0_i32_0 = arith.constant 0 : i32
    %c0_i32_1 = arith.constant 0 : i32
    return %c0_i32, %c0_i32_0 : i32, i32
  }
  func.func @transform_2(%arg0: i32) -> (i32, i32) {
    %c0_i32 = arith.constant 0 : i32
    %c0_i32_0 = arith.constant 0 : i32
    %c0_i32_1 = arith.constant 0 : i32
    return %c0_i32, %c0_i32_0 : i32, i32
  }
  func.func @transform_3(%arg0: i32) -> (i32, i32) {
    %c0_i32 = arith.constant 0 : i32
    %c0_i32_0 = arith.constant 0 : i32
    %c0_i32_1 = arith.constant 0 : i32
    return %c0_i32, %c0_i32_0 : i32, i32
  }
  func.func @transform_4(%arg0: i32) -> (i32, i32) {
    %c0_i32 = arith.constant 0 : i32
    %c0_i32_0 = arith.constant 0 : i32
    %c0_i32_1 = arith.constant 0 : i32
    return %c0_i32, %c0_i32_0 : i32, i32
  }
  func.func @transform_5(%arg0: i32) -> (i32, i32) {
    %c0_i32 = arith.constant 0 : i32
    %c0_i32_0 = arith.constant 0 : i32
    %c0_i32_1 = arith.constant 0 : i32
    return %c0_i32, %c0_i32_0 : i32, i32
  }
  func.func @transform_6(%arg0: i32) -> (i32, i32) {
    %c0_i32 = arith.constant 0 : i32
    %c0_i32_0 = arith.constant 0 : i32
    %c0_i32_1 = arith.constant 0 : i32
    return %c0_i32, %c0_i32_0 : i32, i32
  }
  func.func @transform_7(%arg0: i32) -> (i32, i32) {
    %c0_i32 = arith.constant 0 : i32
    %c0_i32_0 = arith.constant 0 : i32
    return %arg0, %c0_i32 : i32, i32
  }
}

</mosaic_0001>

<bundles_post_ra>
// kernel: mlp_forward.1
= control target key start
LH: loop header
LB: loop body
LE: loop exit
PB: predicated region body
PF: predicated region fallthrough
CT: control target
= control target key end

     0   :  { %12 = vsyncpa [#allocation3], 0  ;;  %s873_s0 = inlined_call_operand.vmem [shape: f32[8,128], index: 0, kind: input, shape index: {}]   ;;  %s874_s1 = inlined_call_operand.hbm [shape: f32[128,128], index: 1, kind: input, shape index: {}]   ;;  %s875_s2 = inlined_call_operand.vmem [shape: f32[1,128], index: 2, kind: input, shape index: {}]   ;;  %s876_s3 = inlined_call_operand.hbm [shape: f32[128,128], index: 3, kind: input, shape index: {}]   ;;  %s877_s4 = inlined_call_operand.vmem [shape: f32[1,128], index: 4, kind: input, shape index: {}]   ;;  %s878_s5 = inlined_call_operand.hbm [shape: f32[128,128], index: 5, kind: input, shape index: {}]   ;;  %s879_s6 = inlined_call_operand.vmem [shape: f32[1,128], index: 6, kind: input, shape index: {}]   ;;  %s880_s7 = inlined_call_operand.hbm [shape: f32[8,128], index: 7, kind: output, shape index: {}]  }
   0x1   :  { %13 = vsyncpa [#allocation6], 0 }
   0x2   :  { %14 = vsyncpa [#allocation4], 0  ;;  %s721_s24 = smov [#allocation5]   ;;  %s722_s26 = smov [#allocation2]  }
   0x3   :  { %s36_s25 = sshll.u32 %s721_s24, 4  ;;  %s22_s27 = sshll.u32 %s722_s26, 4  ;;  %s37_s25 = int_to_ptr.vmem [resolvable:$true] %s36_s25  ;;  %s770_s27 = int_to_ptr.vmem [resolvable:$true] %s22_s27 }
   0x4   :  { %s627_s30 = scalar_lea.hbm %s876_s3, 2048 }
   0x5   :  { %p628_p0 = scmp.ne.s32.totalorder %s876_s3, %s627_s30  ;;  %p631_p1 = scmp.lt.u32.totalorder %s627_s30, %s876_s3 }
   0x7   :  { %p633_p2 = pnand %p631_p1, %p628_p0 }
   0x9   :  { %636 = shalt.err (!%p633_p2)
}
   0xa   :  { %s637_s12 = scalar_lea.vmem %s37_s25, 2048  ;;  %p642_p4 = scmp.lt.s32.totalorder %s37_s25, %s37_s25 }
   0xb   :  { %p638_p3 = scmp.ne.s32.totalorder %s37_s25, %s637_s12  ;;  %p643_p5 = scmp.lt.s32.totalorder %s637_s12, %s637_s12 }
   0xd   :  { %p644_p6 = por %p643_p5, %p642_p4 }
   0xf   :  { %p645_p7 = pnand %p644_p6, %p638_p3 }
  0x11   :  { %648 = shalt.err (!%p645_p7)
}
  0x12   :  { %s723_s13 = smov 128   ;;  %s724_s14 = smov 8  }
  0x13   :  { %42 = dma.hbm_to_vmem [thread:$0]  %s876_s3, 2048, %s37_s25, [#allocation6], %s723_s13, %s723_s13, %s724_s14  }
  0x14   :  { %s649_s19 = scalar_lea.hbm %s874_s1, 2048 }
  0x15   :  { %p650_p8 = scmp.ne.s32.totalorder %s874_s1, %s649_s19  ;;  %p653_p9 = scmp.lt.u32.totalorder %s649_s19, %s874_s1 }
  0x17   :  { %p655_p10 = pnand %p653_p9, %p650_p8 }
  0x19   :  { %658 = shalt.err (!%p655_p10)
}
  0x1a   :  { %s659_s24 = scalar_lea.vmem %s770_s27, 2048  ;;  %p664_p12 = scmp.lt.s32.totalorder %s770_s27, %s770_s27 }
  0x1b   :  { %p660_p11 = scmp.ne.s32.totalorder %s770_s27, %s659_s24  ;;  %p665_p13 = scmp.lt.s32.totalorder %s659_s24, %s659_s24 }
  0x1d   :  { %p666_p0 = por %p665_p13, %p664_p12 }
  0x1f   :  { %p667_p1 = pnand %p666_p0, %p660_p11 }
  0x21   :  { %670 = shalt.err (!%p667_p1)
}
  0x22   :  { %28 = dma.hbm_to_vmem [thread:$0]  %s874_s1, 2048, %s770_s27, [#allocation3], %s723_s13, %s723_s13, %s724_s14  }
  0x23   :  { %s725_s26 = smov [#allocation7]   ;;  %s671_s8 = scalar_lea.hbm %s878_s5, 2048 }
  0x24   :  { %s50_s28 = sshll.u32 %s725_s26, 4  ;;  %p672_p2 = scmp.ne.s32.totalorder %s878_s5, %s671_s8  ;;  %s51_s28 = int_to_ptr.vmem [resolvable:$true] %s50_s28 }
  0x25   :  { %p675_p3 = scmp.lt.u32.totalorder %s671_s8, %s878_s5 }
  0x27   :  { %p677_p4 = pnand %p675_p3, %p672_p2 }
  0x29   :  { %680 = shalt.err (!%p677_p4)
}
  0x2a   :  { %s681_s15 = scalar_lea.vmem %s51_s28, 2048  ;;  %p686_p6 = scmp.lt.s32.totalorder %s51_s28, %s51_s28 }
  0x2b   :  { %p682_p5 = scmp.ne.s32.totalorder %s51_s28, %s681_s15  ;;  %p687_p7 = scmp.lt.s32.totalorder %s681_s15, %s681_s15 }
  0x2d   :  { %p688_p8 = por %p687_p7, %p686_p6 }
  0x2f   :  { %p689_p9 = pnand %p688_p8, %p682_p5 }
  0x31   :  { %692 = shalt.err (!%p689_p9)
}
  0x32   :  { %56 = dma.hbm_to_vmem [thread:$0]  %s878_s5, 2048, %s51_s28, [#allocation6], %s723_s13, %s723_s13, %s724_s14  }
  0x33   :  { %715 = dma.done.wait [#allocation3], 2048  }
  0x34   :  { %716 = vsyncadd [#allocation3], 4294965248 }
  0x35   :  { %717 = dma.done.wait [#allocation6], 4096  }
  0x36   :  { %718 = vsyncadd [#allocation6], 4294963200  ;;  %v726_v0 = vmov 0.0|0.0   ;;  %vm727_vm0 = vmmov 0   ;;  %v728_v1 = vmov 0.0   ;;  %v69_v2 = vld [vmem:[#allocation2] sm:$0xff] }
  0x37   :  { %542 = vmatprep.subr.bf16.mxu0 %v726_v0  ;;  %469 = vmatprep.mubr.msk.f32.mxu0 %vm727_vm0, %v728_v1  ;;  %v70_v3 = vld [vmem:[#allocation2 + $0x8] sm:$0xff]  ;;  %v71_v4 = vld [vmem:[#allocation2 + $0x10] sm:$0xff]  ;;  %v72_v6 = vld [vmem:[#allocation2 + $0x18] sm:$0xff]  ;;  %s729_s19 = smov [#allocation8]  }
  0x38   :  { %566 = vmatprep.subr.bf16.mxu1 %v726_v0  ;;  %504 = vmatprep.mubr.msk.f32.mxu1 %vm727_vm0, %v728_v1  ;;  %v543_v5 = vpack.c.bf16 %v70_v3, %v69_v2  ;;  %v546_v7 = vpack.c.bf16 %v72_v6, %v71_v4  ;;  %v73_v8 = vld [vmem:[#allocation2 + $0x20] sm:$0xff]  ;;  %v74_v9 = vld [vmem:[#allocation2 + $0x28] sm:$0xff]  ;;  %v75_v14 = vld [vmem:[#allocation2 + $0x30] sm:$0xff] }
  0x39   :  { %v171_v10 = vld [vmem:[#allocation5] sm:$0xff]  ;;  %v172_v11 = vld [vmem:[#allocation5 + $0x8] sm:$0xff]  ;;  %v549_v12 = vpack.c.bf16 %v74_v9, %v73_v8  ;;  %v76_v15 = vld [vmem:[#allocation2 + $0x38] sm:$0xff] }
  0x3a   :  { %544 = vmatpush3.bf16.msra.mxu0 %v543_v5  ;;  %v567_v13 = vpack.c.bf16 %v172_v11, %v171_v10  ;;  %v552_v16 = vpack.c.bf16 %v76_v15, %v75_v14  ;;  %v77_v17 = vld [vmem:[#allocation2 + $0x40] sm:$0xff]  ;;  %v78_v18 = vld [vmem:[#allocation2 + $0x48] sm:$0xff]  ;;  %v79_v20 = vld [vmem:[#allocation2 + $0x50] sm:$0xff] }
  0x3b   :  { %545 = vmatprep.subr.bf16.mxu0 %v726_v0  ;;  %v555_v19 = vpack.c.bf16 %v78_v18, %v77_v17  ;;  %v80_v21 = vld [vmem:[#allocation2 + $0x58] sm:$0xff]  ;;  %v81_v23 = vld [vmem:[#allocation2 + $0x60] sm:$0xff]  ;;  %v82_v24 = vld [vmem:[#allocation2 + $0x68] sm:$0xff] }
  0x3c   :  { %568 = vmatpush3.bf16.msra.mxu1 %v567_v13  ;;  %v558_v22 = vpack.c.bf16 %v80_v21, %v79_v20  ;;  %v561_v25 = vpack.c.bf16 %v82_v24, %v81_v23  ;;  %v83_v26 = vld [vmem:[#allocation2 + $0x70] sm:$0xff]  ;;  %v84_v27 = vld [vmem:[#allocation2 + $0x78] sm:$0xff]  ;;  %v68_v29 = vld [vmem:[%s873_s0] sm:$0xff] }
  0x3d   :  { %569 = vmatprep.subr.bf16.mxu1 %v726_v0  ;;  %v564_v28 = vpack.c.bf16 %v84_v27, %v83_v26  ;;  %v173_v30 = vld [vmem:[#allocation5 + $0x10] sm:$0xff]  ;;  %v174_v31 = vld [vmem:[#allocation5 + $0x18] sm:$0xff]  ;;  %v175_v33 = vld [vmem:[#allocation5 + $0x20] sm:$0xff] }
  0x3e   :  { %547 = vmatpush3.bf16.msra.mxu0 %v546_v7  ;;  %v570_v32 = vpack.c.bf16 %v174_v31, %v173_v30  ;;  %v176_v34 = vld [vmem:[#allocation5 + $0x28] sm:$0xff]  ;;  %v177_v36 = vld [vmem:[#allocation5 + $0x30] sm:$0xff]  ;;  %v178_v37 = vld [vmem:[#allocation5 + $0x38] sm:$0xff] }
  0x3f   :  { %548 = vmatprep.subr.bf16.mxu0 %v726_v0  ;;  %v573_v35 = vpack.c.bf16 %v176_v34, %v175_v33  ;;  %v576_v38 = vpack.c.bf16 %v178_v37, %v177_v36  ;;  %v179_v39 = vld [vmem:[#allocation5 + $0x40] sm:$0xff]  ;;  %v180_v40 = vld [vmem:[#allocation5 + $0x48] sm:$0xff]  ;;  %v181_v42 = vld [vmem:[#allocation5 + $0x50] sm:$0xff] }
  0x40   :  { %571 = vmatpush3.bf16.msra.mxu1 %v570_v32  ;;  %v579_v41 = vpack.c.bf16 %v180_v40, %v179_v39  ;;  %v182_v43 = vld [vmem:[#allocation5 + $0x58] sm:$0xff]  ;;  %v183_v45 = vld [vmem:[#allocation5 + $0x60] sm:$0xff]  ;;  %v184_v46 = vld [vmem:[#allocation5 + $0x68] sm:$0xff] }
  0x41   :  { %572 = vmatprep.subr.bf16.mxu1 %v726_v0  ;;  %v582_v44 = vpack.c.bf16 %v182_v43, %v181_v42  ;;  %v585_v47 = vpack.c.bf16 %v184_v46, %v183_v45  ;;  %v185_v48 = vld [vmem:[#allocation5 + $0x70] sm:$0xff]  ;;  %v186_v49 = vld [vmem:[#allocation5 + $0x78] sm:$0xff]  ;;  %v273_v51 = vld [vmem:[#allocation7] sm:$0xff] }
  0x42   :  { %550 = vmatpush3.bf16.msra.mxu0 %v549_v12  ;;  %v588_v50 = vpack.c.bf16 %v186_v49, %v185_v48  ;;  %v274_v52 = vld [vmem:[#allocation7 + $0x8] sm:$0xff]  ;;  %v383_v54 = vld [vmem:[%s875_s2] ss:$0 sm:$0xff]  ;;  %v275_v4 = vld [vmem:[#allocation7 + $0x10] sm:$0xff] }
  0x43   :  { %551 = vmatprep.subr.bf16.mxu0 %v726_v0  ;;  %v591_v53 = vpack.c.bf16 %v274_v52, %v273_v51  ;;  %v276_v5 = vld [vmem:[#allocation7 + $0x18] sm:$0xff]  ;;  %v277_v7 = vld [vmem:[#allocation7 + $0x20] sm:$0xff]  ;;  %v278_v8 = vld [vmem:[#allocation7 + $0x28] sm:$0xff] }
  0x44   :  { %574 = vmatpush3.bf16.msra.mxu1 %v573_v35  ;;  %v594_v6 = vpack.c.bf16 %v276_v5, %v275_v4  ;;  %v597_v9 = vpack.c.bf16 %v278_v8, %v277_v7  ;;  %v279_v10 = vld [vmem:[#allocation7 + $0x30] sm:$0xff]  ;;  %v280_v11 = vld [vmem:[#allocation7 + $0x38] sm:$0xff]  ;;  %v281_v13 = vld [vmem:[#allocation7 + $0x40] sm:$0xff] }
  0x45   :  { %575 = vmatprep.subr.bf16.mxu1 %v726_v0  ;;  %v600_v12 = vpack.c.bf16 %v280_v11, %v279_v10  ;;  %v282_v14 = vld [vmem:[#allocation7 + $0x48] sm:$0xff]  ;;  %v284_v17 = vld [vmem:[#allocation7 + $0x58] sm:$0xff] }
  0x46   :  { %553 = vmatpush3.bf16.msra.mxu0 %v552_v16  ;;  %v603_v15 = vpack.c.bf16 %v282_v14, %v281_v13  ;;  %v283_v16 = vld [vmem:[#allocation7 + $0x50] sm:$0xff]  ;;  %v286_v20 = vld [vmem:[#allocation7 + $0x68] sm:$0xff]  ;;  %v288_v23 = vld [vmem:[#allocation7 + $0x78] sm:$0xff] }
  0x47   :  { %554 = vmatprep.subr.bf16.mxu0 %v726_v0  ;;  %v606_v18 = vpack.c.bf16 %v284_v17, %v283_v16 }
  0x48   :  { %577 = vmatpush3.bf16.msra.mxu1 %v576_v38 }
  0x49   :  { %578 = vmatprep.subr.bf16.mxu1 %v726_v0 }
  0x4a   :  { %556 = vmatpush3.bf16.msra.mxu0 %v555_v19  ;;  %v285_v19 = vld [vmem:[#allocation7 + $0x60] sm:$0xff] }
  0x4b   :  { %557 = vmatprep.subr.bf16.mxu0 %v726_v0  ;;  %v609_v21 = vpack.c.bf16 %v286_v20, %v285_v19 }
  0x4c   :  { %580 = vmatpush3.bf16.msra.mxu1 %v579_v41 }
  0x4d   :  { %581 = vmatprep.subr.bf16.mxu1 %v726_v0 }
  0x4e   :  { %559 = vmatpush3.bf16.msra.mxu0 %v558_v22  ;;  %v287_v22 = vld [vmem:[#allocation7 + $0x70] sm:$0xff] }
  0x4f   :  { %560 = vmatprep.subr.bf16.mxu0 %v726_v0  ;;  %v612_v24 = vpack.c.bf16 %v288_v23, %v287_v22 }
  0x50   :  { %583 = vmatpush3.bf16.msra.mxu1 %v582_v44 }
  0x51   :  { %584 = vmatprep.subr.bf16.mxu1 %v726_v0 }
  0x52   :  { %562 = vmatpush3.bf16.msra.mxu0 %v561_v25  ;;  %v384_v25 = vld [vmem:[%s877_s4] ss:$0 sm:$0xff]  ;;  %s373_s4 = sshll.u32 %s729_s19, 4  ;;  %s374_s4 = int_to_ptr.vmem [resolvable:$true] %s373_s4 }
  0x53   :  { %563 = vmatprep.subr.bf16.mxu0 %v726_v0  ;;  %s693_s20 = scalar_lea.vmem %s374_s4, 128  ;;  %p698_p11 = scmp.lt.s32.totalorder %s374_s4, %s374_s4 }
  0x54   :  { %586 = vmatpush3.bf16.msra.mxu1 %v585_v47  ;;  %p694_p10 = scmp.ne.s32.totalorder %s374_s4, %s693_s20  ;;  %p699_p12 = scmp.lt.s32.totalorder %s693_s20, %s693_s20 }
  0x55   :  { %587 = vmatprep.subr.bf16.mxu1 %v726_v0 }
  0x56   :  { %565 = vmatpush3.bf16.msra.mxu0 %v564_v28  ;;  %p700_p13 = por %p699_p12, %p698_p11 }
  0x57   :  { %590 = vmatprep.subr.bf16.mxu0 %v726_v0 }
  0x58   :  { %589 = vmatpush3.bf16.msra.mxu1 %v588_v50  ;;  %p701_p0 = pnand %p700_p13, %p694_p10 }
  0x59   :  { %470 = vmatmul.mubr.f32.vlgmr.msra.gmra.mrb[0].mxu0 %v68_v29 }
  0x5a   :  { %539 = vmatprep.mubr.msk.f32.mxu0 %vm727_vm0, %v728_v1  ;;  %592 = vmatpush3.bf16.msra.mxu0 %v591_v53 }
  0x5b   :  { %593 = vmatprep.subr.bf16.mxu0 %v726_v0 }
  0x5e   :  { %595 = vmatpush3.bf16.msra.mxu0 %v594_v6 }
  0x5f   :  { %596 = vmatprep.subr.bf16.mxu0 %v726_v0 }
  0x62   :  { %598 = vmatpush3.bf16.msra.mxu0 %v597_v9 }
  0x63   :  { %599 = vmatprep.subr.bf16.mxu0 %v726_v0 }
  0x66   :  { %601 = vmatpush3.bf16.msra.mxu0 %v600_v12 }
  0x67   :  { %602 = vmatprep.subr.bf16.mxu0 %v726_v0 }
  0x6a   :  { %604 = vmatpush3.bf16.msra.mxu0 %v603_v15 }
  0x6b   :  { %605 = vmatprep.subr.bf16.mxu0 %v726_v0 }
  0x6e   :  { %607 = vmatpush3.bf16.msra.mxu0 %v606_v18 }
  0x6f   :  { %608 = vmatprep.subr.bf16.mxu0 %v726_v0 }
  0x72   :  { %610 = vmatpush3.bf16.msra.mxu0 %v609_v21 }
  0x73   :  { %611 = vmatprep.subr.bf16.mxu0 %v726_v0  ;;  %v385_v0 = vld [vmem:[%s879_s6] ss:$0 sm:$0xff] }
  0x76   :  { %613 = vmatpush3.bf16.msra.mxu0 %v612_v24 }
 0x12c   :  { %v158_v55 = vpop.f32.mrb[0].mxu0 }
 0x12d   :  { %v159_v56 = vadd.f32 %v383_v54, %v158_v55  ;;  %v471_v57 = vpop.f32.mrb[1].mxu0 }
 0x12f   :  { %v163_v58 = vmul.f32 0.044715, %v159_v56  ;;  %v162_v1 = vmul.f32 0.5, %v159_v56 }
 0x131   :  { %v164_v59 = vmul.f32 %v163_v58, %v159_v56 }
 0x133   :  { %v165_v60 = vmul.f32 %v164_v59, %v159_v56 }
 0x135   :  { %v166_v61 = vadd.f32 %v165_v60, %v159_v56 }
 0x137   :  { %v167_v62 = vmul.f32 0.7978846, %v166_v61 }
 0x139   :  { %623 = vtanh.f32 %v167_v62 }
 0x143   :  { %v624_v63 = vpop.eup %623 }
 0x144   :  { %v169_v2 = vadd.f32 1.0, %v624_v63 }
 0x146   :  { %v170_v3 = vmul.f32 %v169_v2, %v162_v1 }
 0x148   :  { %505 = vmatmul.mubr.f32.vlgmr.msra.gmra.mrb[0].mxu1 %v170_v3 }
 0x21b   :  { %v260_v26 = vpop.f32.mrb[0].mxu1 }
 0x21c   :  { %v261_v27 = vadd.f32 %v384_v25, %v260_v26  ;;  %v506_v28 = vpop.f32.mrb[1].mxu1 }
 0x21e   :  { %v265_v29 = vmul.f32 0.044715, %v261_v27  ;;  %v264_v35 = vmul.f32 0.5, %v261_v27 }
 0x220   :  { %v266_v30 = vmul.f32 %v265_v29, %v261_v27 }
 0x222   :  { %v267_v31 = vmul.f32 %v266_v30, %v261_v27 }
 0x224   :  { %v268_v32 = vadd.f32 %v267_v31, %v261_v27 }
 0x226   :  { %v269_v33 = vmul.f32 0.7978846, %v268_v32 }
 0x228   :  { %625 = vtanh.f32 %v269_v33 }
 0x232   :  { %v626_v34 = vpop.eup %625 }
 0x233   :  { %v271_v36 = vadd.f32 1.0, %v626_v34 }
 0x235   :  { %v272_v37 = vmul.f32 %v271_v36, %v264_v35 }
 0x237   :  { %540 = vmatmul.mubr.f32.vlgmr.msra.gmra.mrb[2].mxu0 %v272_v37 }
 0x30a   :  { %v362_v38 = vpop.f32.mrb[2].mxu0 }
 0x30b   :  { %v363_v39 = vadd.f32 %v385_v0, %v362_v38  ;;  %v541_v40 = vpop.f32.mrb[3].mxu0 }
 0x30d   :  { %366 = vst [vmem:[#allocation8] sm:$0xff] %v363_v39 }
 0x30e   :  { %704 = shalt.err (!%p701_p0)
}
 0x30f   :  { %s705_s23 = scalar_lea.hbm %s880_s7, 128 }
 0x310   :  { %p706_p1 = scmp.ne.s32.totalorder %s880_s7, %s705_s23  ;;  %p709_p2 = scmp.lt.u32.totalorder %s705_s23, %s880_s7 }
 0x312   :  { %p711_p3 = pnand %p709_p2, %p706_p1 }
 0x314   :  { %714 = shalt.err (!%p711_p3)
}
 0x315   :  { %376 = dma.vmem_to_hbm [thread:$0]  %s374_s4, 128, %s880_s7, [#allocation4]  }
 0x316   :  { %719 = dma.done.wait [#allocation4], 128  }
 0x317   :  { %720 = vsyncadd [#allocation4], 4294967168 }
 0x318   :  { %380 = vsyncpa [#allocation3], 1 }
 0x319   :  { %381 = vsyncpa [#allocation6], 1 }
 0x31a   :  { %382 = vsyncpa [#allocation4], 1 }

</bundles_post_ra>
